<compile_context>
chip_gen: v7x
topology: tpu7x:2x2x1
jax: 0.10.0
libtpu: 0.0.40
codegen_flags: <defaults>
</compile_context>

<pallas_src>
import jax
import jax.numpy as jnp
import numpy as np
from jax.experimental import pallas as pl
from jax.experimental.pallas import tpu as pltpu

C, H, W = 3, 16, 16
HW = H * W                  # 256, lane-dense image width inside the kernel
NKP = 8                     # keypoints per image
B = 128                     # batch of images per forward call
B_TILE = 64                 # images per grid step -> (B_TILE*C, 256) = (192, 256) block
TILE_ROWS = B_TILE * C

# Block-diagonal lane-reversal permutation (compile-time constant, VMEM-resident):
# P[r, c] = 1  iff  r//W == c//W  and  r%W == (W-1) - c%W,
# so (img @ P)[:, h*W + w] = img[:, h*W + (W-1-w)]  == Fliplr for every row.
_P_FLIP = jnp.asarray(
    np.kron(np.eye(H, dtype=np.float32), np.fliplr(np.eye(W, dtype=np.float32))))


def _flip_kernel(img_ref, p_ref, kp_ref, img_out_ref, kp_out_ref):
    """Deterministic Fliplr on a lane-dense (TILE_ROWS, HW) image slab + keypoint affine."""
    # Image flip: one MXU dot against the resident 0/1 permutation matrix.
    img_out_ref[...] = jnp.dot(img_ref[...], p_ref[...],
                               preferred_element_type=jnp.float32)

    # Keypoint affine of the flip: x' = (W-1) - x (row 0), y' = y (row 1).
    kp = kp_ref[...]
    row = jax.lax.broadcasted_iota(jnp.int32, kp_ref.shape, 0)
    kp_out_ref[...] = jnp.where(row == 0, float(W - 1) - kp, kp)


def aug_keypoints_forward(img, keypoints, gate):
    """img: (B,C,H,W) f32, keypoints: (B,NKP,2) f32, gate: (1,) i32 (1 => apply aug)."""
    assert img.shape == (B, C, H, W) and keypoints.shape == (B, NKP, 2)
    n_tiles = B // B_TILE

    def _apply(img, keypoints):
        img_flat = img.reshape(B * C, HW)                                   # lane-dense slab
        kp_flat = jnp.transpose(keypoints, (2, 0, 1)).reshape(2, B * NKP)   # lane-dense kps

        img_out_flat, kp_out_flat = pl.pallas_call(
            _flip_kernel,
            out_shape=(
                jax.ShapeDtypeStruct((B * C, HW), jnp.float32),
                jax.ShapeDtypeStruct((2, B * NKP), jnp.float32),
            ),
            grid=(n_tiles,),
            in_specs=[
                pl.BlockSpec((TILE_ROWS, HW), lambda b: (b, 0)),       # image tile
                pl.BlockSpec((HW, HW), lambda b: (0, 0)),              # resident constant P
                pl.BlockSpec((2, B_TILE * NKP), lambda b: (0, b)),     # keypoint tile
            ],
            out_specs=(
                pl.BlockSpec((TILE_ROWS, HW), lambda b: (b, 0)),
                pl.BlockSpec((2, B_TILE * NKP), lambda b: (0, b)),
            ),
            compiler_params=pltpu.CompilerParams(
                dimension_semantics=("parallel",)),
        )(img_flat, _P_FLIP, kp_flat)

        img_out = img_out_flat.reshape(B, C, H, W)
        kp_out = jnp.transpose(kp_out_flat.reshape(2, B, NKP), (1, 2, 0))
        return img_out, kp_out

    def _skip(img, keypoints):
        return img, keypoints

    # Host-side Bernoulli(p) decision: skip branch does zero HBM traffic.
    return jax.lax.cond(gate[0] != 0, _apply, _skip, img, keypoints)


def _reference(img, keypoints, gate):
    """Pure-JAX reference of the gated Fliplr aug."""
    g = gate[0] != 0
    img_aug = img[..., ::-1]
    kp_aug = jnp.stack([(W - 1) - keypoints[..., 0], keypoints[..., 1]], axis=-1)
    return (jnp.where(g, img_aug, img), jnp.where(g, kp_aug, keypoints))


if __name__ == "__main__":
    key = jax.random.PRNGKey(0)
    k_img, k_kp, k_p = jax.random.split(key, 3)

    # Deterministic "module params": p and the Bernoulli(p) draw (torch.rand(1) < p).
    p = 0.5
    u = jax.random.uniform(k_p, ())
    gate_rand = (u < p).astype(jnp.int32).reshape((1,))

    img = jax.random.uniform(k_img, (B, C, H, W), jnp.float32) * 255.0
    keypoints = jax.random.uniform(k_kp, (B, NKP, 2), jnp.float32) * (W - 1)

    fwd = jax.jit(aug_keypoints_forward)

    # Check the random draw plus both forced branches of the gate.
    for gate in (gate_rand,
                 jnp.ones((1,), jnp.int32),
                 jnp.zeros((1,), jnp.int32)):
        img_out, kp_out = fwd(img, keypoints, gate)
        img_out = jax.block_until_ready(img_out)
        kp_out = jax.block_until_ready(kp_out)

        img_ref, kp_ref = _reference(img, keypoints, gate)
        assert np.allclose(np.asarray(img_out), np.asarray(img_ref), atol=1e-5)
        assert np.allclose(np.asarray(kp_out), np.asarray(kp_ref), atol=1e-5)

    print("KERNEL_OK")
</pallas_src>

<mosaic_0001>
module attributes {stable_mosaic.version = 11 : i64} {
  func.func @_flip_kernel(%arg0: i32, %arg1: memref<192x256xf32, #tpu.memory_space<vmem>>, %arg2: memref<256x256xf32, #tpu.memory_space<vmem>>, %arg3: memref<2x512xf32, #tpu.memory_space<vmem>>, %arg4: memref<192x256xf32, #tpu.memory_space<vmem>>, %arg5: memref<2x512xf32, #tpu.memory_space<vmem>>) attributes {dimension_semantics = [#tpu.dimension_semantics<parallel>], iteration_bounds = array<i64: 2>, scalar_prefetch = 0 : i64, scratch_operands = 0 : i64, tpu.core_type = #tpu.core_type<tc>, window_params = [{transform_indices = @transform_0, window_bounds = array<i64: 192, 256>}, {pipeline_mode = #tpu.pipeline_mode<synchronous>, transform_indices = @transform_1, window_bounds = array<i64: 256, 256>}, {transform_indices = @transform_2, window_bounds = array<i64: 2, 512>}, {transform_indices = @transform_3, window_bounds = array<i64: 192, 256>}, {transform_indices = @transform_4, window_bounds = array<i64: 2, 512>}]} {
    %c0 = arith.constant 0 : index
    %c0_0 = arith.constant 0 : index
    %0 = vector.load %arg1[%c0, %c0_0] : memref<192x256xf32, #tpu.memory_space<vmem>>, vector<192x256xf32>
    %c0_1 = arith.constant 0 : index
    %c0_2 = arith.constant 0 : index
    %1 = vector.load %arg2[%c0_1, %c0_2] : memref<256x256xf32, #tpu.memory_space<vmem>>, vector<256x256xf32>
    %cst = arith.constant dense<0.000000e+00> : vector<192x256xf32>
    %2 = tpu.matmul %0, %1, %cst {dimension_numbers = #tpu.dot_dimension_numbers<[1], [0], [0], [1], [0, 0, 1, 1], [], []>} : vector<192x256xf32>, vector<256x256xf32>, vector<192x256xf32> -> vector<192x256xf32>
    %c0_3 = arith.constant 0 : index
    %c0_4 = arith.constant 0 : index
    %3 = vector.load %arg4[%c0_3, %c0_4] : memref<192x256xf32, #tpu.memory_space<vmem>>, vector<192x256xf32>
    tpu.vector_store %arg4[%c0_3, %c0_4], %2 {strides = array<i32>} : memref<192x256xf32, #tpu.memory_space<vmem>>, vector<192x256xf32>,
    %c0_5 = arith.constant 0 : index
    %c0_6 = arith.constant 0 : index
    %4 = vector.load %arg3[%c0_5, %c0_6] : memref<2x512xf32, #tpu.memory_space<vmem>>, vector<2x512xf32>
    %5 = tpu.iota {dimensions = array<i32: 0>} : vector<2x512xi32>
    %c0_i32 = arith.constant 0 : i32
    %6 = vector.broadcast %c0_i32 : i32 to vector<2x512xi32>
    %7 = arith.cmpi eq, %5, %6 : vector<2x512xi32>
    %cst_7 = arith.constant 1.500000e+01 : f32
    %8 = vector.broadcast %cst_7 : f32 to vector<2x512xf32>
    %9 = arith.subf %8, %4 : vector<2x512xf32>
    %10 = arith.select %7, %9, %4 : vector<2x512xi1>, vector<2x512xf32>
    %c0_8 = arith.constant 0 : index
    %c0_9 = arith.constant 0 : index
    %11 = vector.load %arg5[%c0_8, %c0_9] : memref<2x512xf32, #tpu.memory_space<vmem>>, vector<2x512xf32>
    tpu.vector_store %arg5[%c0_8, %c0_9], %10 {strides = array<i32>} : memref<2x512xf32, #tpu.memory_space<vmem>>, vector<2x512xf32>,
    return
  }
  func.func @transform_0(%arg0: i32) -> (i32, i32) {
    %c0_i32 = arith.constant 0 : i32
    %c0_i32_0 = arith.constant 0 : i32
    return %arg0, %c0_i32 : i32, i32
  }
  func.func @transform_1(%arg0: i32) -> (i32, i32) {
    %c0_i32 = arith.constant 0 : i32
    %c0_i32_0 = arith.constant 0 : i32
    %c0_i32_1 = arith.constant 0 : i32
    return %c0_i32, %c0_i32_0 : i32, i32
  }
  func.func @transform_2(%arg0: i32) -> (i32, i32) {
    %c0_i32 = arith.constant 0 : i32
    %c0_i32_0 = arith.constant 0 : i32
    return %c0_i32, %arg0 : i32, i32
  }
  func.func @transform_3(%arg0: i32) -> (i32, i32) {
    %c0_i32 = arith.constant 0 : i32
    %c0_i32_0 = arith.constant 0 : i32
    return %arg0, %c0_i32 : i32, i32
  }
  func.func @transform_4(%arg0: i32) -> (i32, i32) {
    %c0_i32 = arith.constant 0 : i32
    %c0_i32_0 = arith.constant 0 : i32
    return %c0_i32, %arg0 : i32, i32
  }
}

</mosaic_0001>

<bundles_post_ra>
// kernel: branch_1_fun.1
= control target key start
LH: loop header
LB: loop body
LE: loop exit
PB: predicated region body
PF: predicated region fallthrough
CT: control target
= control target key end

     0   :  { %s948_s15 = smov 0   ;;  %s1281_s0 = inlined_call_operand.vmem [shape: f32[384,256], index: 0, kind: input, shape index: {}]   ;;  %s1282_s1 = inlined_call_operand.vmem [shape: f32[256,256], index: 1, kind: input, shape index: {}]   ;;  %s1283_s2 = inlined_call_operand.vmem [shape: f32[2,1024], index: 2, kind: input, shape index: {}]   ;;  %s1284_s3 = inlined_call_operand.vmem [shape: f32[384,256], index: 3, kind: output, shape index: {0}]   ;;  %s1285_s4 = inlined_call_operand.vmem [shape: f32[2,1024], index: 4, kind: output, shape index: {1}]  }
   0x1 LB: > { %s791_s16 = sadd.s32 4294967295, %s920_s15   ;;  %p795_p0 = scmp.ge.s32.totalorder %s920_s15, 1  ;;  %s920_s15 = sphi %s948_s15, %s15_s15  }
   0x2   : > { %p178_p1 = scmp.lt.s32.totalorder %s920_s15, 3 }
   0x4   : > { %p179_p2 = pnand %p795_p0, %p178_p1 }
   0x5   : > { %v291_v0 = vld [vmem:[%s1282_s1 + $0x8] sm:$0xff] (!%p179_p2)  ;;  %v293_v1 = vld [vmem:[%s1282_s1 + $0x18] sm:$0xff] (!%p179_p2)  ;;  %v290_v2 = vld [vmem:[%s1282_s1] sm:$0xff] (!%p179_p2)  ;;  %s216_s11 = smul.u32 (!%p179_p2), 24, %s791_s16  ;;  %s798_s18 = sshll.u32 (!%p179_p2), %s791_s16, 2 }
   0x6   : > { %182 = sbr.rel (%p179_p2) target bundleno = 330 (0x14a), region = 32  ;;  %v808_v3 = vpack.c.bf16 (!%p179_p2), %v293_v1, %v291_v0  ;;  %v292_v4 = vld [vmem:[%s1282_s1 + $0x10] sm:$0xff] (!%p179_p2)  ;;  %v295_v5 = vld [vmem:[%s1282_s1 + $0x28] sm:$0xff] (!%p179_p2)  ;;  %v297_v6 = vld [vmem:[%s1282_s1 + $0x38] sm:$0xff] (!%p179_p2)  ;;  %p224_p4 = scmp.lt.s32.totalorder (!%p179_p2), %s798_s18, 7 }
   0x7   : > { %v810_v7 = vpack.c.bf16 (!%p179_p2), %v292_v4, %v290_v2  ;;  %v812_v8 = vpack.c.bf16 (!%p179_p2), %v297_v6, %v295_v5  ;;  %v294_v9 = vld [vmem:[%s1282_s1 + $0x20] sm:$0xff] (!%p179_p2)  ;;  %v296_v10 = vld [vmem:[%s1282_s1 + $0x30] sm:$0xff] (!%p179_p2)  ;;  %v299_v11 = vld [vmem:[%s1282_s1 + $0x48] sm:$0xff] (!%p179_p2)  ;;  %p217_p3 = scmp.lt.s32.totalorder (!%p179_p2), %s216_s11, 47 }
   0x8   : > { %809 = vmatprep.subr.bf16.mxu0 (!%p179_p2), %v808_v3  ;;  %872 = vmatprep.subr.bf16.mxu1 (!%p179_p2), %v808_v3  ;;  %v301_v12 = vld [vmem:[%s1282_s1 + $0x58] sm:$0xff] (!%p179_p2)  ;;  %v814_v13 = vpack.c.bf16 (!%p179_p2), %v296_v10, %v294_v9  ;;  %v298_v15 = vld [vmem:[%s1282_s1 + $0x40] sm:$0xff] (!%p179_p2)  ;;  %v300_v16 = vld [vmem:[%s1282_s1 + $0x50] sm:$0xff] (!%p179_p2) }
   0x9   : > { %811 = vmatpush1.bf16.msra.mxu0 (!%p179_p2), %v810_v7  ;;  %888 = vmatpush1.bf16.msra.mxu1 (!%p179_p2), %v810_v7  ;;  %v816_v14 = vpack.c.bf16 (!%p179_p2), %v301_v12, %v299_v11  ;;  %v303_v17 = vld [vmem:[%s1282_s1 + $0x68] sm:$0xff] (!%p179_p2)  ;;  %v305_v18 = vld [vmem:[%s1282_s1 + $0x78] sm:$0xff] (!%p179_p2)  ;;  %v818_v19 = vpack.c.bf16 (!%p179_p2), %v300_v16, %v298_v15  ;;  %v302_v21 = vld [vmem:[%s1282_s1 + $0x60] sm:$0xff] (!%p179_p2) }
   0xa   : > { %813 = vmatprep.subr.bf16.mxu0 (!%p179_p2), %v812_v8  ;;  %873 = vmatprep.subr.bf16.mxu1 (!%p179_p2), %v812_v8  ;;  %v820_v20 = vpack.c.bf16 (!%p179_p2), %v305_v18, %v303_v17  ;;  %v304_v22 = vld [vmem:[%s1282_s1 + $0x70] sm:$0xff] (!%p179_p2)  ;;  %v307_v23 = vld [vmem:[%s1282_s1 + $0x88] sm:$0xff] (!%p179_p2)  ;;  %v309_v24 = vld [vmem:[%s1282_s1 + $0x98] sm:$0xff] (!%p179_p2) }
   0xb   : > { %v822_v25 = vpack.c.bf16 (!%p179_p2), %v304_v22, %v302_v21  ;;  %v824_v26 = vpack.c.bf16 (!%p179_p2), %v309_v24, %v307_v23  ;;  %v306_v27 = vld [vmem:[%s1282_s1 + $0x80] sm:$0xff] (!%p179_p2)  ;;  %v308_v28 = vld [vmem:[%s1282_s1 + $0x90] sm:$0xff] (!%p179_p2)  ;;  %v311_v29 = vld [vmem:[%s1282_s1 + $0xa8] sm:$0xff] (!%p179_p2) }
   0xc   : > { %v313_v30 = vld [vmem:[%s1282_s1 + $0xb8] sm:$0xff] (!%p179_p2)  ;;  %v826_v31 = vpack.c.bf16 (!%p179_p2), %v308_v28, %v306_v27  ;;  %v310_v33 = vld [vmem:[%s1282_s1 + $0xa0] sm:$0xff] (!%p179_p2)  ;;  %v312_v34 = vld [vmem:[%s1282_s1 + $0xb0] sm:$0xff] (!%p179_p2) }
   0xd   : > { %815 = vmatpush1.bf16.msra.mxu0 %v814_v13  ;;  %889 = vmatpush1.bf16.msra.mxu1 %v814_v13  ;;  %s1287_s11 = smov (!%p217_p3, %s216_s11), 47  ;;  %v828_v32 = vpack.c.bf16 %v313_v30, %v311_v29  ;;  %v315_v35 = vld [vmem:[%s1282_s1 + $0xc8] sm:$0xff]  ;;  %v317_v36 = vld [vmem:[%s1282_s1 + $0xd8] sm:$0xff]  ;;  %v830_v37 = vpack.c.bf16 %v312_v34, %v310_v33  ;;  %v314_v38 = vld [vmem:[%s1282_s1 + $0xc0] sm:$0xff]  ;;  %s1289_s18 = smov (!%p224_p4, %s798_s18), 7 }
   0xe   : > { %817 = vmatprep.subr.bf16.mxu0 %v816_v14  ;;  %874 = vmatprep.subr.bf16.mxu1 %v816_v14  ;;  %s806_s13 = sshll.u32 %s1287_s11, 4  ;;  %v832_v39 = vpack.c.bf16 %v317_v36, %v315_v35  ;;  %v316_v40 = vld [vmem:[%s1282_s1 + $0xd0] sm:$0xff]  ;;  %v319_v43 = vld [vmem:[%s1282_s1 + $0xe8] sm:$0xff]  ;;  %v321_v44 = vld [vmem:[%s1282_s1 + $0xf8] sm:$0xff]  ;;  %s799_s19 = sshll.u32 %s1289_s18, 1 }
   0xf   : > { %s1044_s26 = scalar_lea.vmem %s1281_s0, %s806_s13  ;;  %v834_v45 = vpack.c.bf16 %v316_v40, %v314_v38  ;;  %v836_v46 = vpack.c.bf16 %v321_v44, %v319_v43  ;;  %v318_v47 = vld [vmem:[%s1282_s1 + $0xe0] sm:$0xff]  ;;  %v320_v48 = vld [vmem:[%s1282_s1 + $0xf0] sm:$0xff]  ;;  %v323_v49 = vld [vmem:[%s1282_s1 + $0x108] sm:$0xff]  ;;  %s227_s22 = scalar_lea.vmem %s1283_s2, %s799_s19 }
  0x10   : > { %v243_v41 = vld [vmem:[%s1044_s26 + $0x8] sm:$0xff]  ;;  %v325_v50 = vld [vmem:[%s1282_s1 + $0x118] sm:$0xff]  ;;  %v838_v51 = vpack.c.bf16 %v320_v48, %v318_v47  ;;  %v322_v53 = vld [vmem:[%s1282_s1 + $0x100] sm:$0xff]  ;;  %s240_s23 = scalar_lea.vmem %s1285_s4, %s799_s19  ;;  %s1228_s27 = scalar_lea.vmem %s1284_s3, %s806_s13 }
  0x11   : > { %819 = vmatpush1.bf16.msra.mxu0 %v818_v19  ;;  %890 = vmatpush1.bf16.msra.mxu1 %v818_v19  ;;  %v267_v42 = vld [vmem:[%s1044_s26 + $0xc8] sm:$0xff]  ;;  %v840_v52 = vpack.c.bf16 %v325_v50, %v323_v49  ;;  %v324_v54 = vld [vmem:[%s1282_s1 + $0x110] sm:$0xff]  ;;  %v329_v56 = vld [vmem:[%s1282_s1 + $0x138] sm:$0xff] }
  0x12   : > { %821 = vmatprep.subr.bf16.mxu0 %v820_v20  ;;  %875 = vmatprep.subr.bf16.mxu1 %v820_v20  ;;  %v327_v55 = vld [vmem:[%s1282_s1 + $0x128] sm:$0xff]  ;;  %v842_v57 = vpack.c.bf16 %v324_v54, %v322_v53  ;;  %v326_v59 = vld [vmem:[%s1282_s1 + $0x120] sm:$0xff]  ;;  %v328_v60 = vld [vmem:[%s1282_s1 + $0x130] sm:$0xff] }
  0x13   : > { %418 = vmatprep.mubr.f32.mxu0 %v243_v41  ;;  %490 = vmatprep.mubr.f32.mxu1 %v267_v42  ;;  %v844_v58 = vpack.c.bf16 %v329_v56, %v327_v55  ;;  %v331_v61 = vld [vmem:[%s1282_s1 + $0x148] sm:$0xff]  ;;  %v333_v62 = vld [vmem:[%s1282_s1 + $0x158] sm:$0xff]  ;;  %v846_v63 = vpack.c.bf16 %v328_v60, %v326_v59  ;;  %v330_v1 = vld [vmem:[%s1282_s1 + $0x140] sm:$0xff] }
  0x14   : > { %v848_v0 = vpack.c.bf16 %v333_v62, %v331_v61  ;;  %v332_v2 = vld [vmem:[%s1282_s1 + $0x150] sm:$0xff]  ;;  %v335_v3 = vld [vmem:[%s1282_s1 + $0x168] sm:$0xff]  ;;  %v337_v4 = vld [vmem:[%s1282_s1 + $0x178] sm:$0xff] }
  0x15   : > { %823 = vmatpush1.bf16.msra.mxu0 %v822_v25  ;;  %891 = vmatpush1.bf16.msra.mxu1 %v822_v25  ;;  %v850_v5 = vpack.c.bf16 %v332_v2, %v330_v1  ;;  %v852_v6 = vpack.c.bf16 %v337_v4, %v335_v3  ;;  %v334_v7 = vld [vmem:[%s1282_s1 + $0x160] sm:$0xff]  ;;  %v336_v8 = vld [vmem:[%s1282_s1 + $0x170] sm:$0xff]  ;;  %v339_v9 = vld [vmem:[%s1282_s1 + $0x188] sm:$0xff] }
  0x16   : > { %825 = vmatprep.subr.bf16.mxu0 %v824_v26  ;;  %876 = vmatprep.subr.bf16.mxu1 %v824_v26  ;;  %v341_v10 = vld [vmem:[%s1282_s1 + $0x198] sm:$0xff]  ;;  %v854_v11 = vpack.c.bf16 %v336_v8, %v334_v7  ;;  %v338_v13 = vld [vmem:[%s1282_s1 + $0x180] sm:$0xff]  ;;  %v340_v14 = vld [vmem:[%s1282_s1 + $0x190] sm:$0xff] }
  0x17   : > { %v856_v12 = vpack.c.bf16 %v341_v10, %v339_v9  ;;  %v343_v15 = vld [vmem:[%s1282_s1 + $0x1a8] sm:$0xff]  ;;  %v345_v16 = vld [vmem:[%s1282_s1 + $0x1b8] sm:$0xff]  ;;  %v858_v17 = vpack.c.bf16 %v340_v14, %v338_v13  ;;  %v342_v19 = vld [vmem:[%s1282_s1 + $0x1a0] sm:$0xff] }
  0x18   : > { %v860_v18 = vpack.c.bf16 %v345_v16, %v343_v15  ;;  %v344_v20 = vld [vmem:[%s1282_s1 + $0x1b0] sm:$0xff]  ;;  %v347_v21 = vld [vmem:[%s1282_s1 + $0x1c8] sm:$0xff]  ;;  %v349_v22 = vld [vmem:[%s1282_s1 + $0x1d8] sm:$0xff]  ;;  %v612_v16 = vlaneseq }
  0x19   : > { %827 = vmatpush1.bf16.msra.mxu0 %v826_v31  ;;  %892 = vmatpush1.bf16.msra.mxu1 %v826_v31  ;;  %v862_v23 = vpack.c.bf16 %v344_v20, %v342_v19  ;;  %v864_v24 = vpack.c.bf16 %v349_v22, %v347_v21  ;;  %v346_v25 = vld [vmem:[%s1282_s1 + $0x1c0] sm:$0xff]  ;;  %v348_v26 = vld [vmem:[%s1282_s1 + $0x1d0] sm:$0xff]  ;;  %v351_v27 = vld [vmem:[%s1282_s1 + $0x1e8] sm:$0xff] }
  0x1a   : > { %829 = vmatprep.subr.bf16.mxu0 %v828_v32  ;;  %877 = vmatprep.subr.bf16.mxu1 %v828_v32  ;;  %v353_v28 = vld [vmem:[%s1282_s1 + $0x1f8] sm:$0xff]  ;;  %v866_v29 = vpack.c.bf16 %v348_v26, %v346_v25  ;;  %v350_v31 = vld [vmem:[%s1282_s1 + $0x1e0] sm:$0xff]  ;;  %v352_v32 = vld [vmem:[%s1282_s1 + $0x1f0] sm:$0xff]  ;;  %v613_v20 = vshrl.u32 %v612_v16, 7 }
  0x1b   : > { %v868_v30 = vpack.c.bf16 %v353_v28, %v351_v27  ;;  %v870_v33 = vpack.c.bf16 %v352_v32, %v350_v31  ;;  %v242_v34 = vld [vmem:[%s1044_s26] sm:$0xff]  ;;  %v245_v36 = vld [vmem:[%s1044_s26 + $0x18] sm:$0xff]  ;;  %v244_v38 = vld [vmem:[%s1044_s26 + $0x10] sm:$0xff] }
  0x1c   : > { %v266_v35 = vld [vmem:[%s1044_s26 + $0xc0] sm:$0xff]  ;;  %v247_v40 = vld [vmem:[%s1044_s26 + $0x28] sm:$0xff]  ;;  %v249_v44 = vld [vmem:[%s1044_s26 + $0x38] sm:$0xff]  ;;  %vm614_vm0 = vcmp.eq.s32.totalorder %v613_v20, 0 }
  0x1d   : > { %831 = vmatpush1.bf16.msra.mxu0 %v830_v37  ;;  %893 = vmatpush1.bf16.msra.mxu1 %v830_v37  ;;  %v269_v37 = vld [vmem:[%s1044_s26 + $0xd8] sm:$0xff]  ;;  %v271_v41 = vld [vmem:[%s1044_s26 + $0xe8] sm:$0xff]  ;;  %v246_v42 = vld [vmem:[%s1044_s26 + $0x20] sm:$0xff] }
  0x1e   : > { %833 = vmatprep.subr.bf16.mxu0 %v832_v39  ;;  %878 = vmatprep.subr.bf16.mxu1 %v832_v39  ;;  %v268_v39 = vld [vmem:[%s1044_s26 + $0xd0] sm:$0xff]  ;;  %v270_v43 = vld [vmem:[%s1044_s26 + $0xe0] sm:$0xff]  ;;  %v251_v48 = vld [vmem:[%s1044_s26 + $0x48] sm:$0xff] }
  0x1f   : > { %v272_v47 = vld [vmem:[%s1044_s26 + $0xf0] sm:$0xff]  ;;  %v275_v49 = vld [vmem:[%s1044_s26 + $0x108] sm:$0xff]  ;;  %v250_v50 = vld [vmem:[%s1044_s26 + $0x40] sm:$0xff] }
  0x20   : > { %v277_v53 = vld [vmem:[%s1044_s26 + $0x118] sm:$0xff]  ;;  %v252_v54 = vld [vmem:[%s1044_s26 + $0x50] sm:$0xff]  ;;  %v255_v56 = vld [vmem:[%s1044_s26 + $0x68] sm:$0xff] }
  0x21   : > { %835 = vmatpush1.bf16.msra.mxu0 %v834_v45  ;;  %894 = vmatpush1.bf16.msra.mxu1 %v834_v45  ;;  %v273_v45 = vld [vmem:[%s1044_s26 + $0xf8] sm:$0xff]  ;;  %v276_v55 = vld [vmem:[%s1044_s26 + $0x110] sm:$0xff]  ;;  %v278_v59 = vld [vmem:[%s1044_s26 + $0x120] sm:$0xff] }
  0x22   : > { %837 = vmatprep.subr.bf16.mxu0 %v836_v46  ;;  %879 = vmatprep.subr.bf16.mxu1 %v836_v46  ;;  %v248_v46 = vld [vmem:[%s1044_s26 + $0x30] sm:$0xff]  ;;  %v257_v60 = vld [vmem:[%s1044_s26 + $0x78] sm:$0xff]  ;;  %v283_v1 = vld [vmem:[%s1044_s26 + $0x148] sm:$0xff] }
  0x23   : > { %v281_v61 = vld [vmem:[%s1044_s26 + $0x138] sm:$0xff]  ;;  %v256_v62 = vld [vmem:[%s1044_s26 + $0x70] sm:$0xff]  ;;  %v258_v2 = vld [vmem:[%s1044_s26 + $0x80] sm:$0xff] }
  0x24   : > { %v282_v3 = vld [vmem:[%s1044_s26 + $0x140] sm:$0xff]  ;;  %v261_v4 = vld [vmem:[%s1044_s26 + $0x98] sm:$0xff]  ;;  %v284_v7 = vld [vmem:[%s1044_s26 + $0x150] sm:$0xff] }
  0x25   : > { %839 = vmatpush1.bf16.msra.mxu0 %v838_v51  ;;  %895 = vmatpush1.bf16.msra.mxu1 %v838_v51  ;;  %v274_v51 = vld [vmem:[%s1044_s26 + $0x100] sm:$0xff]  ;;  %v263_v8 = vld [vmem:[%s1044_s26 + $0xa8] sm:$0xff]  ;;  %v289_v13 = vld [vmem:[%s1044_s26 + $0x178] sm:$0xff] }
  0x26   : > { %841 = vmatprep.subr.bf16.mxu0 %v840_v52  ;;  %880 = vmatprep.subr.bf16.mxu1 %v840_v52  ;;  %v253_v52 = vld [vmem:[%s1044_s26 + $0x58] sm:$0xff]  ;;  %v287_v9 = vld [vmem:[%s1044_s26 + $0x168] sm:$0xff]  ;;  %v262_v10 = vld [vmem:[%s1044_s26 + $0xa0] sm:$0xff] }
  0x27   : > { %v264_v14 = vld [vmem:[%s1044_s26 + $0xb0] sm:$0xff]  ;;  %v611_v19 = vld [vmem:[%s227_s22] sm:$0xff] }
  0x28   : > { %v288_v15 = vld [vmem:[%s1044_s26 + $0x170] sm:$0xff]  ;;  %v615_v21 = vsub.f32 15.0, %v611_v19  ;;  %v639_v25 = vcombine.high %v611_v19, %v611_v19 }
  0x29   : > { %843 = vmatpush1.bf16.msra.mxu0 %v842_v57  ;;  %896 = vmatpush1.bf16.msra.mxu1 %v842_v57  ;;  %v279_v57 = vld [vmem:[%s1044_s26 + $0x128] sm:$0xff] }
  0x2a   : > { %845 = vmatprep.subr.bf16.mxu0 %v844_v58  ;;  %881 = vmatprep.subr.bf16.mxu1 %v844_v58  ;;  %v254_v58 = vld [vmem:[%s1044_s26 + $0x60] sm:$0xff] }
  0x2d   : > { %847 = vmatpush1.bf16.msra.mxu0 %v846_v63  ;;  %897 = vmatpush1.bf16.msra.mxu1 %v846_v63  ;;  %v280_v63 = vld [vmem:[%s1044_s26 + $0x130] sm:$0xff] }
  0x2e   : > { %849 = vmatprep.subr.bf16.mxu0 %v848_v0  ;;  %882 = vmatprep.subr.bf16.mxu1 %v848_v0  ;;  %v259_v0 = vld [vmem:[%s1044_s26 + $0x88] sm:$0xff] }
  0x31   : > { %851 = vmatpush1.bf16.msra.mxu0 %v850_v5  ;;  %898 = vmatpush1.bf16.msra.mxu1 %v850_v5  ;;  %v285_v5 = vld [vmem:[%s1044_s26 + $0x158] sm:$0xff] }
  0x32   : > { %853 = vmatprep.subr.bf16.mxu0 %v852_v6  ;;  %883 = vmatprep.subr.bf16.mxu1 %v852_v6  ;;  %v260_v6 = vld [vmem:[%s1044_s26 + $0x90] sm:$0xff] }
  0x35   : > { %855 = vmatpush1.bf16.msra.mxu0 %v854_v11  ;;  %899 = vmatpush1.bf16.msra.mxu1 %v854_v11  ;;  %v286_v11 = vld [vmem:[%s1044_s26 + $0x160] sm:$0xff] }
  0x36   : > { %857 = vmatprep.subr.bf16.mxu0 %v856_v12  ;;  %884 = vmatprep.subr.bf16.mxu1 %v856_v12  ;;  %v265_v12 = vld [vmem:[%s1044_s26 + $0xb8] sm:$0xff] }
  0x39   : > { %859 = vmatpush1.bf16.msra.mxu0 %v858_v17  ;;  %900 = vmatpush1.bf16.msra.mxu1 %v858_v17  ;;  %v922_v17 = vmov 1983009808  }
  0x3a   : > { %861 = vmatprep.subr.bf16.mxu0 %v860_v18  ;;  %885 = vmatprep.subr.bf16.mxu1 %v860_v18  ;;  %v619_v18 = vunpack.c.l.s4 %v922_v17 }
  0x3c   : > { %v620_v22 = vunpack.c.0.s8 %v619_v18 }
  0x3d   : > { %863 = vmatpush1.bf16.msra.mxu0 %v862_v23  ;;  %901 = vmatpush1.bf16.msra.mxu1 %v862_v23  ;;  %v617_v23 = vcombine.high %v615_v21, %v615_v21 }
  0x3e   : > { %865 = vmatprep.subr.bf16.mxu0 %v864_v24  ;;  %886 = vmatprep.subr.bf16.mxu1 %v864_v24  ;;  %v623_v24 = vsub.s32 %v620_v22, %v613_v20 }
  0x40   : > { %v624_v26 = vrot.slane %v615_v21, %v623_v24  ;;  %v631_v27 = vrot.slane %v617_v23, %v623_v24  ;;  %v646_v28 = vrot.slane %v611_v19, %v623_v24 }
  0x41   : > { %867 = vmatpush1.bf16.msra.mxu0 %v866_v29  ;;  %902 = vmatpush1.bf16.msra.mxu1 %v866_v29  ;;  %v653_v29 = vrot.slane %v639_v25, %v623_v24 }
  0x42   : > { %869 = vmatprep.subr.bf16.mxu0 %v868_v30  ;;  %887 = vmatprep.subr.bf16.mxu1 %v868_v30  ;;  %v632_v30 = vcombine.high %v624_v26, %v624_v26  ;;  %v633_v31 = vcombine.high %v631_v27, %v631_v27  ;;  %v654_v32 = vcombine.high %v646_v28, %v646_v28 }
  0x45   : > { %871 = vmatpush1.bf16.msra.mxu0 %v870_v33  ;;  %903 = vmatpush1.bf16.msra.mxu1 %v870_v33  ;;  %v655_v33 = vcombine.high %v653_v29, %v653_v29 }
  0x48   : > { %419 = vmatmul.mubr.f32.vlgmr.msra.gmra.mrb[0].mxu0 %v242_v34  ;;  %491 = vmatmul.mubr.f32.vlgmr.msra.gmra.mrb[0].mxu1 %v266_v35  ;;  %v660_v34 = vsel %vm614_vm0, %v624_v26, %v646_v28  ;;  %v661_v35 = vsel %vm614_vm0, %v632_v30, %v654_v32 }
  0x49   : > { %424 = vmatprep.mubr.f32.mxu0 %v245_v36  ;;  %496 = vmatprep.mubr.f32.mxu1 %v269_v37  ;;  %v662_v36 = vsel %vm614_vm0, %v631_v27, %v653_v29  ;;  %v663_v37 = vsel %vm614_vm0, %v633_v31, %v655_v33 }
  0x4c   : > { %425 = vmatmul.mubr.f32.gmra.mrb[2].mxu0 %v244_v38  ;;  %497 = vmatmul.mubr.f32.gmra.mrb[2].mxu1 %v268_v39  ;;  %v668_v38 = vcombine.low %v660_v34, %v661_v35  ;;  %v669_v39 = vcombine.low %v662_v36, %v663_v37 }
  0x4d   : > { %430 = vmatprep.mubr.f32.mxu0 %v247_v40  ;;  %502 = vmatprep.mubr.f32.mxu1 %v271_v41 }
  0x4e   : > { %v676_v40 = vrot.slane %v668_v38, %v623_v24  ;;  %v683_v41 = vrot.slane %v669_v39, %v623_v24 }
  0x50   : > { %431 = vmatmul.mubr.f32.gmra.mrb[4].mxu0 %v246_v42  ;;  %503 = vmatmul.mubr.f32.gmra.mrb[4].mxu1 %v270_v43  ;;  %v684_v42 = vcombine.low %v676_v40, %v683_v41 }
  0x51   : > { %436 = vmatprep.mubr.f32.mxu0 %v249_v44  ;;  %508 = vmatprep.mubr.f32.mxu1 %v273_v45 }
  0x52   : > { %686 = vst [vmem:[%s240_s23] sm:$0xff] %v684_v42 }
  0x54   : > { %437 = vmatmul.mubr.f32.gmra.mrb[6].mxu0 %v248_v46  ;;  %509 = vmatmul.mubr.f32.gmra.mrb[6].mxu1 %v272_v47 }
  0x55   : > { %442 = vmatprep.mubr.f32.mxu0 %v251_v48  ;;  %514 = vmatprep.mubr.f32.mxu1 %v275_v49 }
  0x58   : > { %443 = vmatmul.mubr.f32.gmra.mrb[8].mxu0 %v250_v50  ;;  %515 = vmatmul.mubr.f32.gmra.mrb[8].mxu1 %v274_v51 }
  0x59   : > { %448 = vmatprep.mubr.f32.mxu0 %v253_v52  ;;  %520 = vmatprep.mubr.f32.mxu1 %v277_v53 }
  0x5c   : > { %449 = vmatmul.mubr.f32.gmra.mrb[10].mxu0 %v252_v54  ;;  %521 = vmatmul.mubr.f32.gmra.mrb[10].mxu1 %v276_v55 }
  0x5d   : > { %454 = vmatprep.mubr.f32.mxu0 %v255_v56  ;;  %526 = vmatprep.mubr.f32.mxu1 %v279_v57 }
  0x60   : > { %455 = vmatmul.mubr.f32.gmra.mrb[12].mxu0 %v254_v58  ;;  %527 = vmatmul.mubr.f32.gmra.mrb[12].mxu1 %v278_v59 }
  0x61   : > { %460 = vmatprep.mubr.f32.mxu0 %v257_v60  ;;  %532 = vmatprep.mubr.f32.mxu1 %v281_v61 }
  0x64   : > { %461 = vmatmul.mubr.f32.gmra.mrb[14].mxu0 %v256_v62  ;;  %533 = vmatmul.mubr.f32.gmra.mrb[14].mxu1 %v280_v63 }
  0x65   : > { %466 = vmatprep.mubr.f32.mxu0 %v259_v0  ;;  %538 = vmatprep.mubr.f32.mxu1 %v283_v1 }
  0x68   : > { %467 = vmatmul.mubr.f32.gmra.mrb[16].mxu0 %v258_v2  ;;  %539 = vmatmul.mubr.f32.gmra.mrb[16].mxu1 %v282_v3 }
  0x69   : > { %472 = vmatprep.mubr.f32.mxu0 %v261_v4  ;;  %544 = vmatprep.mubr.f32.mxu1 %v285_v5 }
  0x6c   : > { %473 = vmatmul.mubr.f32.gmra.mrb[18].mxu0 %v260_v6  ;;  %545 = vmatmul.mubr.f32.gmra.mrb[18].mxu1 %v284_v7 }
  0x6d   : > { %478 = vmatprep.mubr.f32.mxu0 %v263_v8  ;;  %550 = vmatprep.mubr.f32.mxu1 %v287_v9 }
  0x70   : > { %479 = vmatmul.mubr.f32.gmra.mrb[20].mxu0 %v262_v10  ;;  %551 = vmatmul.mubr.f32.gmra.mrb[20].mxu1 %v286_v11 }
  0x71   : > { %484 = vmatprep.mubr.f32.mxu0 %v265_v12  ;;  %556 = vmatprep.mubr.f32.mxu1 %v289_v13 }
  0x74   : > { %485 = vmatmul.mubr.f32.gmra.mrb[22].mxu0 %v264_v14  ;;  %557 = vmatmul.mubr.f32.gmra.mrb[22].mxu1 %v288_v15 }
 0x11b   : > { %v420_v43 = vpop.f32.mrb[0].mxu0  ;;  %v492_v44 = vpop.f32.mrb[0].mxu1 }
 0x11c   : > { %563 = vst [vmem:[%s1228_s27] sm:$0xff] %v420_v43  ;;  %587 = vst [vmem:[%s1228_s27 + $0xc0] sm:$0xff] %v492_v44  ;;  %v422_v45 = vpop.f32.mrb[1].mxu0  ;;  %v494_v46 = vpop.f32.mrb[1].mxu1 }
 0x11d   : > { %564 = vst [vmem:[%s1228_s27 + $0x8] sm:$0xff] %v422_v45  ;;  %588 = vst [vmem:[%s1228_s27 + $0xc8] sm:$0xff] %v494_v46 }
 0x11f   : > { %v426_v47 = vpop.f32.mrb[2].mxu0  ;;  %v498_v48 = vpop.f32.mrb[2].mxu1 }
 0x120   : > { %565 = vst [vmem:[%s1228_s27 + $0x10] sm:$0xff] %v426_v47  ;;  %589 = vst [vmem:[%s1228_s27 + $0xd0] sm:$0xff] %v498_v48  ;;  %v428_v49 = vpop.f32.mrb[3].mxu0  ;;  %v500_v50 = vpop.f32.mrb[3].mxu1 }
 0x121   : > { %566 = vst [vmem:[%s1228_s27 + $0x18] sm:$0xff] %v428_v49  ;;  %590 = vst [vmem:[%s1228_s27 + $0xd8] sm:$0xff] %v500_v50 }
 0x123   : > { %v432_v51 = vpop.f32.mrb[4].mxu0  ;;  %v504_v52 = vpop.f32.mrb[4].mxu1 }
 0x124   : > { %567 = vst [vmem:[%s1228_s27 + $0x20] sm:$0xff] %v432_v51  ;;  %591 = vst [vmem:[%s1228_s27 + $0xe0] sm:$0xff] %v504_v52  ;;  %v434_v53 = vpop.f32.mrb[5].mxu0  ;;  %v506_v54 = vpop.f32.mrb[5].mxu1 }
 0x125   : > { %568 = vst [vmem:[%s1228_s27 + $0x28] sm:$0xff] %v434_v53  ;;  %592 = vst [vmem:[%s1228_s27 + $0xe8] sm:$0xff] %v506_v54 }
 0x127   : > { %v438_v55 = vpop.f32.mrb[6].mxu0  ;;  %v510_v56 = vpop.f32.mrb[6].mxu1 }
 0x128   : > { %569 = vst [vmem:[%s1228_s27 + $0x30] sm:$0xff] %v438_v55  ;;  %593 = vst [vmem:[%s1228_s27 + $0xf0] sm:$0xff] %v510_v56  ;;  %v440_v57 = vpop.f32.mrb[7].mxu0  ;;  %v512_v58 = vpop.f32.mrb[7].mxu1 }
 0x129   : > { %570 = vst [vmem:[%s1228_s27 + $0x38] sm:$0xff] %v440_v57  ;;  %594 = vst [vmem:[%s1228_s27 + $0xf8] sm:$0xff] %v512_v58 }
 0x12b   : > { %v444_v59 = vpop.f32.mrb[8].mxu0  ;;  %v516_v60 = vpop.f32.mrb[8].mxu1 }
 0x12c   : > { %571 = vst [vmem:[%s1228_s27 + $0x40] sm:$0xff] %v444_v59  ;;  %595 = vst [vmem:[%s1228_s27 + $0x100] sm:$0xff] %v516_v60  ;;  %v446_v61 = vpop.f32.mrb[9].mxu0  ;;  %v518_v62 = vpop.f32.mrb[9].mxu1 }
 0x12d   : > { %572 = vst [vmem:[%s1228_s27 + $0x48] sm:$0xff] %v446_v61  ;;  %596 = vst [vmem:[%s1228_s27 + $0x108] sm:$0xff] %v518_v62 }
 0x12f   : > { %v450_v63 = vpop.f32.mrb[10].mxu0  ;;  %v522_v0 = vpop.f32.mrb[10].mxu1 }
 0x130   : > { %573 = vst [vmem:[%s1228_s27 + $0x50] sm:$0xff] %v450_v63  ;;  %597 = vst [vmem:[%s1228_s27 + $0x110] sm:$0xff] %v522_v0  ;;  %v452_v1 = vpop.f32.mrb[11].mxu0  ;;  %v524_v2 = vpop.f32.mrb[11].mxu1 }
 0x131   : > { %574 = vst [vmem:[%s1228_s27 + $0x58] sm:$0xff] %v452_v1  ;;  %598 = vst [vmem:[%s1228_s27 + $0x118] sm:$0xff] %v524_v2 }
 0x133   : > { %v456_v3 = vpop.f32.mrb[12].mxu0  ;;  %v528_v4 = vpop.f32.mrb[12].mxu1 }
 0x134   : > { %575 = vst [vmem:[%s1228_s27 + $0x60] sm:$0xff] %v456_v3  ;;  %599 = vst [vmem:[%s1228_s27 + $0x120] sm:$0xff] %v528_v4  ;;  %v458_v5 = vpop.f32.mrb[13].mxu0  ;;  %v530_v6 = vpop.f32.mrb[13].mxu1 }
 0x135   : > { %576 = vst [vmem:[%s1228_s27 + $0x68] sm:$0xff] %v458_v5  ;;  %600 = vst [vmem:[%s1228_s27 + $0x128] sm:$0xff] %v530_v6 }
 0x137   : > { %v462_v7 = vpop.f32.mrb[14].mxu0  ;;  %v534_v8 = vpop.f32.mrb[14].mxu1 }
 0x138   : > { %577 = vst [vmem:[%s1228_s27 + $0x70] sm:$0xff] %v462_v7  ;;  %601 = vst [vmem:[%s1228_s27 + $0x130] sm:$0xff] %v534_v8  ;;  %v464_v9 = vpop.f32.mrb[15].mxu0  ;;  %v536_v10 = vpop.f32.mrb[15].mxu1 }
 0x139   : > { %578 = vst [vmem:[%s1228_s27 + $0x78] sm:$0xff] %v464_v9  ;;  %602 = vst [vmem:[%s1228_s27 + $0x138] sm:$0xff] %v536_v10 }
 0x13b   : > { %v468_v11 = vpop.f32.mrb[16].mxu0  ;;  %v540_v12 = vpop.f32.mrb[16].mxu1 }
 0x13c   : > { %579 = vst [vmem:[%s1228_s27 + $0x80] sm:$0xff] %v468_v11  ;;  %603 = vst [vmem:[%s1228_s27 + $0x140] sm:$0xff] %v540_v12  ;;  %v470_v13 = vpop.f32.mrb[17].mxu0  ;;  %v542_v14 = vpop.f32.mrb[17].mxu1 }
 0x13d   : > { %580 = vst [vmem:[%s1228_s27 + $0x88] sm:$0xff] %v470_v13  ;;  %604 = vst [vmem:[%s1228_s27 + $0x148] sm:$0xff] %v542_v14 }
 0x13f   : > { %v474_v15 = vpop.f32.mrb[18].mxu0  ;;  %v546_v16 = vpop.f32.mrb[18].mxu1 }
 0x140   : > { %581 = vst [vmem:[%s1228_s27 + $0x90] sm:$0xff] %v474_v15  ;;  %605 = vst [vmem:[%s1228_s27 + $0x150] sm:$0xff] %v546_v16  ;;  %v476_v17 = vpop.f32.mrb[19].mxu0  ;;  %v548_v18 = vpop.f32.mrb[19].mxu1 }
 0x141   : > { %582 = vst [vmem:[%s1228_s27 + $0x98] sm:$0xff] %v476_v17  ;;  %606 = vst [vmem:[%s1228_s27 + $0x158] sm:$0xff] %v548_v18 }
 0x143   : > { %v480_v19 = vpop.f32.mrb[20].mxu0  ;;  %v552_v20 = vpop.f32.mrb[20].mxu1 }
 0x144   : > { %583 = vst [vmem:[%s1228_s27 + $0xa0] sm:$0xff] %v480_v19  ;;  %607 = vst [vmem:[%s1228_s27 + $0x160] sm:$0xff] %v552_v20  ;;  %v482_v21 = vpop.f32.mrb[21].mxu0  ;;  %v554_v22 = vpop.f32.mrb[21].mxu1 }
 0x145   : > { %584 = vst [vmem:[%s1228_s27 + $0xa8] sm:$0xff] %v482_v21  ;;  %608 = vst [vmem:[%s1228_s27 + $0x168] sm:$0xff] %v554_v22 }
 0x147   : > { %v486_v23 = vpop.f32.mrb[22].mxu0  ;;  %v558_v24 = vpop.f32.mrb[22].mxu1 }
 0x148   : > { %585 = vst [vmem:[%s1228_s27 + $0xb0] sm:$0xff] %v486_v23  ;;  %609 = vst [vmem:[%s1228_s27 + $0x170] sm:$0xff] %v558_v24  ;;  %v488_v25 = vpop.f32.mrb[23].mxu0  ;;  %v560_v26 = vpop.f32.mrb[23].mxu1 }
 0x149   : > { %586 = vst [vmem:[%s1228_s27 + $0xb8] sm:$0xff] %v488_v25  ;;  %610 = vst [vmem:[%s1228_s27 + $0x178] sm:$0xff] %v560_v26 }
 0x14a PF: > { %s15_s15 = sadd.s32 1, %s920_s15  }
 0x14b   : > { %p12_p5 = scmp.ge.s32.totalorder %s15_s15, 4  }
 0x14d   :  { %14 = sbr.rel (!%p12_p5) target bundleno = 1 (0x1), region = 77 }

</bundles_post_ra>
